<compile_context>
chip_gen: v6e
topology: v6e:2x2x1
jax: 0.10.0
libtpu: 0.0.40
codegen_flags: <defaults>
</compile_context>

<pallas_src>
import math
import functools

import jax
import jax.numpy as jnp
import numpy as np
from jax import lax
from jax.experimental import pallas as pl
from jax.experimental.pallas import tpu as pltpu


BLK = 8  # sublane block: rows per associative-scan block / per output store


def _round_up(x, m):
    return ((x + m - 1) // m) * m


def _linoss_kernel(u_ref, bcat_ref, ccat_ref, d_ref, cp_ref, out_ref,
                   bu_ref, state_ref):
    """One sequence chunk: Bu matmul -> blocked associative scan fused with the
    per-block output matmul (+ D skip path)."""
    CL = u_ref.shape[0]
    P2 = bu_ref.shape[1]
    num_blocks = CL // BLK

    # Zero the carried scan state on the first chunk only.
    @pl.when(pl.program_id(0) == 0)
    def _():
        state_ref[...] = jnp.zeros_like(state_ref)

    # ---- Bu for real+imag planes in a single MXU matmul ---------------------
    #   bcat = [Br^T | Bi^T]  (H_pad, 2P);  bu = [Bu_r | Bu_i]  (CL, 2P)
    u_mm = u_ref[...].astype(bcat_ref.dtype)
    bu_ref[...] = jnp.dot(u_mm, bcat_ref[...],
                          preferred_element_type=jnp.float32)

    # ---- loop-invariant operands (hoisted out of the block loop) ------------
    # cp rows: [0:8) (M^s)_11, [8:16) (M^s)_12, [16:24) (M^s)_21,
    #          [24:32) (M^s)_22, row 32: f1 scale, row 33: f2 scale.
    apow = cp_ref[0:BLK, :]
    bpow = cp_ref[BLK:2 * BLK, :]
    cpow = cp_ref[2 * BLK:3 * BLK, :]
    dpow = cp_ref[3 * BLK:4 * BLK, :]
    f1c = cp_ref[4 * BLK:4 * BLK + 1, :]
    f2c = cp_ref[4 * BLK + 1:4 * BLK + 2, :]
    ccat = ccat_ref[...]
    d_row = d_ref[...]
    ridx = lax.broadcasted_iota(jnp.int32, (BLK, P2), 0)

    def block_body(blk, carry):
        z0, y0 = carry                                      # (1, 2P) each
        idx = blk * BLK
        base = idx if isinstance(idx, int) else pl.multiple_of(idx, BLK)

        bu_blk = bu_ref[pl.ds(base, BLK), :]                # (8, 2P)
        # Forcing terms for this block (no F scratch planes; VPU filler).
        p = f1c * bu_blk                                    # z-component of F
        q = f2c * bu_blk                                    # y-component of F

        # Hillis-Steele associative scan over the 8 sublanes:
        # 3 rounds with the fixed transition powers M^1, M^2, M^4.
        for d in (1, 2, 4):
            keep = ridx >= d
            p_sh = jnp.where(keep, pltpu.roll(p, shift=d, axis=0), 0.0)
            q_sh = jnp.where(keep, pltpu.roll(q, shift=d, axis=0), 0.0)
            a_d = apow[d - 1:d, :]
            b_d = bpow[d - 1:d, :]
            c_d = cpow[d - 1:d, :]
            e_d = dpow[d - 1:d, :]
            p, q = (p + a_d * p_sh + b_d * q_sh,
                    q + c_d * p_sh + e_d * q_sh)

        # Apply the carried state: x_s = M^s x_0 + G_s  (full-tile VPU ops).
        zs = apow * z0 + bpow * y0 + p                      # (8, 2P)
        ys = cpow * z0 + dpow * y0 + q                      # (8, 2P)

        # Interleaved output matmul for these 8 rows: ys @ [Cr^T; -Ci^T] + D*u.
        u_blk = u_ref[pl.ds(base, BLK), :]
        out_ref[pl.ds(base, BLK), :] = (
            jnp.dot(ys.astype(ccat.dtype), ccat,
                    preferred_element_type=jnp.float32)
            + u_blk * d_row)

        return (zs[BLK - 1:BLK, :], ys[BLK - 1:BLK, :])

    carry0 = (state_ref[0:1, :], state_ref[1:2, :])
    if num_blocks <= 4:
        carry = carry0
        for blk in range(num_blocks):                       # trace-time unroll
            carry = block_body(blk, carry)
    else:
        carry = lax.fori_loop(0, num_blocks, block_body, carry0, unroll=2)

    # Persist the scan state for the next chunk of the grid.
    state_ref[0:1, :] = carry[0]
    state_ref[1:2, :] = carry[1]


def _discretization_coeffs(A_diag, steps, discretization):
    """Diagonal (P,) recurrence coefficients m11,m12,m21,m22 and F scalings."""
    if discretization == "IM":
        schur = 1.0 / (1.0 + steps ** 2.0 * A_diag)
        m11 = 1.0 - steps ** 2.0 * A_diag * schur
        m12 = -1.0 * steps * A_diag * schur
        m21 = steps * schur
        m22 = schur
        f1c = m11 * steps                 # F1 = M11 * Bu * step
        f2c = m21 * steps                 # F2 = M21 * Bu * step
    elif discretization == "IMEX":
        m11 = jnp.ones_like(A_diag)
        m12 = -1.0 * steps * A_diag
        m21 = steps
        m22 = 1.0 - steps ** 2.0 * A_diag
        f1c = steps                       # F1 = Bu * step
        f2c = steps ** 2.0                # F2 = Bu * step^2
    else:
        raise ValueError("Discretization type not implemented")
    return m11, m12, m21, m22, f1c, f2c


def _vmem_capacity_bytes():
    try:
        return int(pltpu.get_tpu_info().vmem_capacity_bytes)
    except Exception:
        return 64 * 1024 * 1024           # conservative fallback (v7x per-core)


def _vmem_est_bytes(CL, H_pad, P2, mm_bytes):
    return (2 * CL * H_pad * 4            # u chunk (double-buffered, f32)
            + 2 * CL * H_pad * 4          # out chunk (double-buffered, f32)
            + 2 * 2 * H_pad * P2 * mm_bytes   # Bcat + Ccat (double-buffered)
            + 2 * 8 * H_pad * 4           # D row (8-sublane padded)
            + 2 * 40 * P2 * 4             # M-power / forcing coeff block
            + CL * P2 * 4                 # Bu scratch
            + 8 * P2 * 4)                 # carried scan state


@functools.partial(jax.jit, static_argnames=("discretization", "chunk_rows",
                                             "use_bf16_matmul"))
def linoss_layer_forward(params, input_sequence, discretization="IM",
                         chunk_rows=None, use_bf16_matmul=False):
    """Pallas implementation of LinOSSLayer.forward for an (L, H) input."""
    f32 = jnp.float32
    mm_dtype = jnp.bfloat16 if use_bf16_matmul else f32
    mm_bytes = 2 if use_bf16_matmul else 4

    A_diag = jax.nn.relu(params["A_diag"])
    steps = jax.nn.sigmoid(params["steps"])
    Br = params["B"][..., 0]; Bi = params["B"][..., 1]           # (P, H)
    Cr = params["C"][..., 0]; Ci = params["C"][..., 1]           # (H, P)
    D = params["D"]                                              # (H,)

    m11, m12, m21, m22, f1c, f2c = _discretization_coeffs(A_diag, steps,
                                                          discretization)

    L, H = input_sequence.shape
    P = A_diag.shape[0]

    # Lane-dense padding: H -> mult of 128, P -> mult of 64 (so 2P mult of 128).
    H_pad = _round_up(H, 128)
    P_pad = _round_up(P, 64)
    P2 = 2 * P_pad

    # ---- generation-aware chunk sizing (v7x: 64 MiB VMEM, v5e/v6e: 128 MiB) --
    vmem_cap = _vmem_capacity_bytes()
    budget = int(0.6 * vmem_cap)
    if chunk_rows is not None:
        CL = max(BLK, _round_up(int(chunk_rows), BLK))
    else:
        CL = min(_round_up(L, BLK), 4096)
        while CL > BLK and _vmem_est_bytes(CL, H_pad, P2, mm_bytes) > budget:
            CL = max(BLK, _round_up(CL // 2, BLK))
    L_pad = _round_up(L, CL)
    num_chunks = L_pad // CL

    # ---- per-lane 2x2 powers M^1..M^8 (wrapper-side, f32) --------------------
    a = jnp.ones_like(m11); b = jnp.zeros_like(m11)
    c = jnp.zeros_like(m11); d = jnp.ones_like(m11)
    a_rows, b_rows, c_rows, d_rows = [], [], [], []
    for _ in range(BLK):
        a, b, c, d = (m11 * a + m12 * c, m11 * b + m12 * d,
                      m21 * a + m22 * c, m21 * b + m22 * d)
        a_rows.append(a); b_rows.append(b); c_rows.append(c); d_rows.append(d)

    def dup(v):  # (P,) -> (2*P_pad,) laid out as [v | v] over real/imag planes
        row = jnp.zeros((P2,), f32)
        row = row.at[:P].set(v.astype(f32))
        row = row.at[P_pad:P_pad + P].set(v.astype(f32))
        return row

    zrow = jnp.zeros((P2,), f32)
    cp = jnp.stack([dup(r) for r in (a_rows + b_rows + c_rows + d_rows)]
                   + [dup(f1c), dup(f2c)] + [zrow] * 6, axis=0)   # (40, 2P)

    # ---- pre-transposed / concatenated complex weights -----------------------
    bcat = jnp.zeros((H_pad, P2), f32)
    bcat = bcat.at[:H, :P].set(Br.T.astype(f32))
    bcat = bcat.at[:H, P_pad:P_pad + P].set(Bi.T.astype(f32))
    bcat = bcat.astype(mm_dtype)

    ccat = jnp.zeros((P2, H_pad), f32)
    ccat = ccat.at[:P, :H].set(Cr.T.astype(f32))
    ccat = ccat.at[P_pad:P_pad + P, :H].set(-Ci.T.astype(f32))
    ccat = ccat.astype(mm_dtype)

    d_row = jnp.zeros((1, H_pad), f32).at[0, :H].set(D.astype(f32))
    u_pad = jnp.zeros((L_pad, H_pad), f32).at[:L, :H].set(
        input_sequence.astype(f32))

    est = _vmem_est_bytes(CL, H_pad, P2, mm_bytes)
    vmem_limit = int(min(max(2 * est + (4 << 20), 32 << 20),
                         int(0.9 * vmem_cap)))

    out = pl.pallas_call(
        _linoss_kernel,
        out_shape=jax.ShapeDtypeStruct((L_pad, H_pad), f32),
        grid=(num_chunks,),
        in_specs=[
            pl.BlockSpec((CL, H_pad), lambda i: (i, 0)),    # u chunk
            pl.BlockSpec((H_pad, P2), lambda i: (0, 0)),    # Bcat
            pl.BlockSpec((P2, H_pad), lambda i: (0, 0)),    # Ccat
            pl.BlockSpec((1, H_pad), lambda i: (0, 0)),     # D row
            pl.BlockSpec((40, P2), lambda i: (0, 0)),       # M powers / coeffs
        ],
        out_specs=pl.BlockSpec((CL, H_pad), lambda i: (i, 0)),
        scratch_shapes=[
            pltpu.VMEM((CL, P2), f32),   # Bu (real|imag planes)
            pltpu.VMEM((8, P2), f32),    # carried scan state (row0: z, row1: y)
        ],
        compiler_params=pltpu.CompilerParams(
            dimension_semantics=("arbitrary",),
            vmem_limit_bytes=vmem_limit,
        ),
    )(u_pad, bcat, ccat, d_row, cp)

    return out[:L, :H]


def reference_forward(params, u, discretization="IM"):
    """Pure-JAX reference reproducing the PyTorch module semantics."""
    A_diag = jax.nn.relu(params["A_diag"])
    steps = jax.nn.sigmoid(params["steps"])
    B = params["B"][..., 0] + 1j * params["B"][..., 1]
    C = params["C"][..., 0] + 1j * params["C"][..., 1]
    Bu = u.astype(jnp.complex64) @ B.T                           # (L, P)

    m11, m12, m21, m22, _, _ = _discretization_coeffs(A_diag, steps,
                                                      discretization)
    if discretization == "IM":
        F1 = m11 * Bu * steps
        F2 = m21 * Bu * steps
    else:
        F1 = Bu * steps
        F2 = Bu * steps ** 2.0

    def step_fn(carry, f):
        z, y = carry
        f1, f2 = f
        z_n = m11 * z + m12 * y + f1
        y_n = m21 * z + m22 * y + f2
        return (z_n, y_n), y_n

    init = (jnp.zeros_like(F1[0]), jnp.zeros_like(F1[0]))
    _, ys = lax.scan(step_fn, init, (F1, F2))
    out = (ys @ C.T).real + u * params["D"][None, :]
    return out


def init_params(key, ssm_size, H):
    """Deterministic parameter init mirroring the module's __init__ shapes."""
    k1, k2, k3, k4, k5 = jax.random.split(key, 5)
    std_b = 1.0 / math.sqrt(H)
    std_c = 1.0 / math.sqrt(ssm_size)
    return {
        "A_diag": jax.random.uniform(k1, (ssm_size,), jnp.float32),
        "B": jax.random.uniform(k2, (ssm_size, H, 2), jnp.float32,
                                minval=-std_b, maxval=std_b),
        "C": jax.random.uniform(k3, (H, ssm_size, 2), jnp.float32,
                                minval=-std_c, maxval=std_c),
        "D": jax.random.normal(k4, (H,), jnp.float32),
        "steps": jax.random.uniform(k5, (ssm_size,), jnp.float32),
    }


if __name__ == "__main__":
    H, P = 32, 16                                  # features, ssm_size
    key = jax.random.PRNGKey(0)
    kp, kx1, kx2, kx3 = jax.random.split(key, 4)
    params = init_params(kp, P, H)

    x1 = jax.random.normal(kx1, (8, H), jnp.float32)    # 1 chunk, 1 block
    x2 = jax.random.normal(kx2, (32, H), jnp.float32)   # cross-chunk carry
    x3 = jax.random.normal(kx3, (96, H), jnp.float32)   # fori_loop(+unroll) path

    for disc in ("IM", "IMEX"):
        # Single chunk, single 8-row block.
        out = jax.block_until_ready(
            linoss_layer_forward(params, x1, discretization=disc))
        ref = reference_forward(params, x1, discretization=disc)
        assert out.shape == (8, H)
        np.testing.assert_allclose(np.asarray(out), np.asarray(ref),
                                   rtol=1e-3, atol=2e-3)

        # Multi-chunk: carried state across the grid (4 chunks of 8 rows).
        out = jax.block_until_ready(
            linoss_layer_forward(params, x2, discretization=disc,
                                 chunk_rows=8))
        ref = reference_forward(params, x2, discretization=disc)
        assert out.shape == (32, H)
        np.testing.assert_allclose(np.asarray(out), np.asarray(ref),
                                   rtol=1e-3, atol=2e-3)

        # Single chunk with many blocks (exercises lax.fori_loop + unroll=2).
        out = jax.block_until_ready(
            linoss_layer_forward(params, x3, discretization=disc))
        ref = reference_forward(params, x3, discretization=disc)
        assert out.shape == (96, H)
        np.testing.assert_allclose(np.asarray(out), np.asarray(ref),
                                   rtol=1e-3, atol=2e-3)

    # bf16 MXU-operand variant (weights/matmul operands bf16, scan kept f32);
    # loose tolerance since bf16 operand rounding propagates through the scan.
    out = jax.block_until_ready(
        linoss_layer_forward(params, x1, discretization="IM",
                             use_bf16_matmul=True))
    ref = reference_forward(params, x1, discretization="IM")
    np.testing.assert_allclose(np.asarray(out), np.asarray(ref),
                               rtol=5e-2, atol=5e-2)

    print("KERNEL_OK")
</pallas_src>

<mosaic_0001>
module attributes {stable_mosaic.version = 11 : i64} {
  func.func @_linoss_kernel(%arg0: i32, %arg1: memref<8x128xf32, #tpu.memory_space<vmem>>, %arg2: memref<128x128xf32, #tpu.memory_space<vmem>>, %arg3: memref<128x128xf32, #tpu.memory_space<vmem>>, %arg4: memref<1x128xf32, #tpu.memory_space<vmem>>, %arg5: memref<40x128xf32, #tpu.memory_space<vmem>>, %arg6: memref<8x128xf32, #tpu.memory_space<vmem>>, %arg7: memref<8x128xf32, #tpu.memory_space<vmem>>, %arg8: memref<8x128xf32, #tpu.memory_space<vmem>>) attributes {dimension_semantics = [#tpu.dimension_semantics<arbitrary>], iteration_bounds = array<i64: 1>, scalar_prefetch = 0 : i64, scratch_operands = 2 : i64, tpu.core_type = #tpu.core_type<tc>, window_params = [{transform_indices = @transform_0, window_bounds = array<i64: 8, 128>}, {pipeline_mode = #tpu.pipeline_mode<synchronous>, transform_indices = @transform_1, window_bounds = array<i64: 128, 128>}, {pipeline_mode = #tpu.pipeline_mode<synchronous>, transform_indices = @transform_2, window_bounds = array<i64: 128, 128>}, {pipeline_mode = #tpu.pipeline_mode<synchronous>, transform_indices = @transform_3, window_bounds = array<i64: 1, 128>}, {pipeline_mode = #tpu.pipeline_mode<synchronous>, transform_indices = @transform_4, window_bounds = array<i64: 40, 128>}, {transform_indices = @transform_5, window_bounds = array<i64: 8, 128>}]} {
    %c0_i32 = arith.constant 0 : i32
    %0 = arith.cmpi eq, %arg0, %c0_i32 : i32
    %1 = arith.extui %0 : i1 to i32
    %c0_i32_0 = arith.constant 0 : i32
    %2 = arith.cmpi ne, %1, %c0_i32_0 : i32
    scf.if %2 {
      %cst_43 = arith.constant 0.000000e+00 : f32
      %117 = vector.broadcast %cst_43 : f32 to vector<8x128xf32>
      %c0_44 = arith.constant 0 : index
      %c0_45 = arith.constant 0 : index
      %118 = vector.load %arg8[%c0_44, %c0_45] : memref<8x128xf32, #tpu.memory_space<vmem>>, vector<8x128xf32>
      tpu.vector_store %arg8[%c0_44, %c0_45], %117 {strides = array<i32>} : memref<8x128xf32, #tpu.memory_space<vmem>>, vector<8x128xf32>,
    } else {
    }
    %c0 = arith.constant 0 : index
    %c0_1 = arith.constant 0 : index
    %3 = vector.load %arg1[%c0, %c0_1] : memref<8x128xf32, #tpu.memory_space<vmem>>, vector<8x128xf32>
    %c0_2 = arith.constant 0 : index
    %c0_3 = arith.constant 0 : index
    %4 = vector.load %arg2[%c0_2, %c0_3] : memref<128x128xf32, #tpu.memory_space<vmem>>, vector<128x128xf32>
    %cst = arith.constant dense<0.000000e+00> : vector<8x128xf32>
    %5 = tpu.matmul %3, %4, %cst {dimension_numbers = #tpu.dot_dimension_numbers<[1], [0], [0], [1], [0, 0, 1, 1], [], []>} : vector<8x128xf32>, vector<128x128xf32>, vector<8x128xf32> -> vector<8x128xf32>
    %c0_4 = arith.constant 0 : index
    %c0_5 = arith.constant 0 : index
    %6 = vector.load %arg7[%c0_4, %c0_5] : memref<8x128xf32, #tpu.memory_space<vmem>>, vector<8x128xf32>
    tpu.vector_store %arg7[%c0_4, %c0_5], %5 {strides = array<i32>} : memref<8x128xf32, #tpu.memory_space<vmem>>, vector<8x128xf32>,
    %c0_6 = arith.constant 0 : index
    %c0_7 = arith.constant 0 : index
    %7 = vector.load %arg5[%c0_6, %c0_7] : memref<40x128xf32, #tpu.memory_space<vmem>>, vector<8x128xf32>
    %c8 = arith.constant 8 : index
    %c0_8 = arith.constant 0 : index
    %8 = vector.load %arg5[%c8, %c0_8] : memref<40x128xf32, #tpu.memory_space<vmem>>, vector<8x128xf32>
    %c16 = arith.constant 16 : index
    %c0_9 = arith.constant 0 : index
    %9 = vector.load %arg5[%c16, %c0_9] : memref<40x128xf32, #tpu.memory_space<vmem>>, vector<8x128xf32>
    %c24 = arith.constant 24 : index
    %c0_10 = arith.constant 0 : index
    %10 = vector.load %arg5[%c24, %c0_10] : memref<40x128xf32, #tpu.memory_space<vmem>>, vector<8x128xf32>
    %c32 = arith.constant 32 : index
    %c0_11 = arith.constant 0 : index
    %11 = vector.load %arg5[%c32, %c0_11] : memref<40x128xf32, #tpu.memory_space<vmem>>, vector<1x128xf32>
    %c33 = arith.constant 33 : index
    %c0_12 = arith.constant 0 : index
    %12 = vector.load %arg5[%c33, %c0_12] : memref<40x128xf32, #tpu.memory_space<vmem>>, vector<1x128xf32>
    %c0_13 = arith.constant 0 : index
    %c0_14 = arith.constant 0 : index
    %13 = vector.load %arg3[%c0_13, %c0_14] : memref<128x128xf32, #tpu.memory_space<vmem>>, vector<128x128xf32>
    %c0_15 = arith.constant 0 : index
    %c0_16 = arith.constant 0 : index
    %14 = vector.load %arg4[%c0_15, %c0_16] : memref<1x128xf32, #tpu.memory_space<vmem>>, vector<1x128xf32>
    %15 = tpu.iota {dimensions = array<i32: 0>} : vector<8x128xi32>
    %c0_17 = arith.constant 0 : index
    %c0_18 = arith.constant 0 : index
    %16 = vector.load %arg8[%c0_17, %c0_18] : memref<8x128xf32, #tpu.memory_space<vmem>>, vector<1x128xf32>
    %c1 = arith.constant 1 : index
    %c0_19 = arith.constant 0 : index
    %17 = vector.load %arg8[%c1, %c0_19] : memref<8x128xf32, #tpu.memory_space<vmem>>, vector<1x128xf32>
    %c0_20 = arith.constant 0 : index
    %c0_21 = arith.constant 0 : index
    %18 = vector.load %arg7[%c0_20, %c0_21] : memref<8x128xf32, #tpu.memory_space<vmem>>, vector<8x128xf32>
    %19 = vector.broadcast %11 : vector<1x128xf32> to vector<8x128xf32>
    %20 = arith.mulf %19, %18 : vector<8x128xf32>
    %21 = vector.broadcast %12 : vector<1x128xf32> to vector<8x128xf32>
    %22 = arith.mulf %21, %18 : vector<8x128xf32>
    %c1_i32 = arith.constant 1 : i32
    %23 = vector.broadcast %c1_i32 : i32 to vector<8x128xi32>
    %24 = arith.cmpi sge, %15, %23 : vector<8x128xi32>
    %c1_i32_22 = arith.constant 1 : i32
    %25 = tpu.dynamic_rotate %20 by %c1_i32_22 dim 0 : vector<8x128xf32>, i32 -> vector<8x128xf32>
    %cst_23 = arith.constant 0.000000e+00 : f32
    %26 = vector.broadcast %cst_23 : f32 to vector<8x128xf32>
    %27 = arith.select %24, %25, %26 : vector<8x128xi1>, vector<8x128xf32>
    %c1_i32_24 = arith.constant 1 : i32
    %28 = tpu.dynamic_rotate %22 by %c1_i32_24 dim 0 : vector<8x128xf32>, i32 -> vector<8x128xf32>
    %cst_25 = arith.constant 0.000000e+00 : f32
    %29 = vector.broadcast %cst_25 : f32 to vector<8x128xf32>
    %30 = arith.select %24, %28, %29 : vector<8x128xi1>, vector<8x128xf32>
    %31 = vector.extract_strided_slice %7 {offsets = [0, 0], sizes = [1, 128], strides = [1, 1]} : vector<8x128xf32> to vector<1x128xf32>
    %32 = vector.extract_strided_slice %8 {offsets = [0, 0], sizes = [1, 128], strides = [1, 1]} : vector<8x128xf32> to vector<1x128xf32>
    %33 = vector.extract_strided_slice %9 {offsets = [0, 0], sizes = [1, 128], strides = [1, 1]} : vector<8x128xf32> to vector<1x128xf32>
    %34 = vector.extract_strided_slice %10 {offsets = [0, 0], sizes = [1, 128], strides = [1, 1]} : vector<8x128xf32> to vector<1x128xf32>
    %35 = vector.broadcast %31 : vector<1x128xf32> to vector<8x128xf32>
    %36 = arith.mulf %35, %27 : vector<8x128xf32>
    %37 = arith.addf %20, %36 : vector<8x128xf32>
    %38 = vector.broadcast %32 : vector<1x128xf32> to vector<8x128xf32>
    %39 = arith.mulf %38, %30 : vector<8x128xf32>
    %40 = arith.addf %37, %39 : vector<8x128xf32>
    %41 = vector.broadcast %33 : vector<1x128xf32> to vector<8x128xf32>
    %42 = arith.mulf %41, %27 : vector<8x128xf32>
    %43 = arith.addf %22, %42 : vector<8x128xf32>
    %44 = vector.broadcast %34 : vector<1x128xf32> to vector<8x128xf32>
    %45 = arith.mulf %44, %30 : vector<8x128xf32>
    %46 = arith.addf %43, %45 : vector<8x128xf32>
    %c2_i32 = arith.constant 2 : i32
    %47 = vector.broadcast %c2_i32 : i32 to vector<8x128xi32>
    %48 = arith.cmpi sge, %15, %47 : vector<8x128xi32>
    %c2_i32_26 = arith.constant 2 : i32
    %49 = tpu.dynamic_rotate %40 by %c2_i32_26 dim 0 : vector<8x128xf32>, i32 -> vector<8x128xf32>
    %cst_27 = arith.constant 0.000000e+00 : f32
    %50 = vector.broadcast %cst_27 : f32 to vector<8x128xf32>
    %51 = arith.select %48, %49, %50 : vector<8x128xi1>, vector<8x128xf32>
    %c2_i32_28 = arith.constant 2 : i32
    %52 = tpu.dynamic_rotate %46 by %c2_i32_28 dim 0 : vector<8x128xf32>, i32 -> vector<8x128xf32>
    %cst_29 = arith.constant 0.000000e+00 : f32
    %53 = vector.broadcast %cst_29 : f32 to vector<8x128xf32>
    %54 = arith.select %48, %52, %53 : vector<8x128xi1>, vector<8x128xf32>
    %55 = vector.extract_strided_slice %7 {offsets = [1, 0], sizes = [1, 128], strides = [1, 1]} : vector<8x128xf32> to vector<1x128xf32>
    %56 = vector.extract_strided_slice %8 {offsets = [1, 0], sizes = [1, 128], strides = [1, 1]} : vector<8x128xf32> to vector<1x128xf32>
    %57 = vector.extract_strided_slice %9 {offsets = [1, 0], sizes = [1, 128], strides = [1, 1]} : vector<8x128xf32> to vector<1x128xf32>
    %58 = vector.extract_strided_slice %10 {offsets = [1, 0], sizes = [1, 128], strides = [1, 1]} : vector<8x128xf32> to vector<1x128xf32>
    %59 = vector.broadcast %55 : vector<1x128xf32> to vector<8x128xf32>
    %60 = arith.mulf %59, %51 : vector<8x128xf32>
    %61 = arith.addf %40, %60 : vector<8x128xf32>
    %62 = vector.broadcast %56 : vector<1x128xf32> to vector<8x128xf32>
    %63 = arith.mulf %62, %54 : vector<8x128xf32>
    %64 = arith.addf %61, %63 : vector<8x128xf32>
    %65 = vector.broadcast %57 : vector<1x128xf32> to vector<8x128xf32>
    %66 = arith.mulf %65, %51 : vector<8x128xf32>
    %67 = arith.addf %46, %66 : vector<8x128xf32>
    %68 = vector.broadcast %58 : vector<1x128xf32> to vector<8x128xf32>
    %69 = arith.mulf %68, %54 : vector<8x128xf32>
    %70 = arith.addf %67, %69 : vector<8x128xf32>
    %c4_i32 = arith.constant 4 : i32
    %71 = vector.broadcast %c4_i32 : i32 to vector<8x128xi32>
    %72 = arith.cmpi sge, %15, %71 : vector<8x128xi32>
    %c4_i32_30 = arith.constant 4 : i32
    %73 = tpu.dynamic_rotate %64 by %c4_i32_30 dim 0 : vector<8x128xf32>, i32 -> vector<8x128xf32>
    %cst_31 = arith.constant 0.000000e+00 : f32
    %74 = vector.broadcast %cst_31 : f32 to vector<8x128xf32>
    %75 = arith.select %72, %73, %74 : vector<8x128xi1>, vector<8x128xf32>
    %c4_i32_32 = arith.constant 4 : i32
    %76 = tpu.dynamic_rotate %70 by %c4_i32_32 dim 0 : vector<8x128xf32>, i32 -> vector<8x128xf32>
    %cst_33 = arith.constant 0.000000e+00 : f32
    %77 = vector.broadcast %cst_33 : f32 to vector<8x128xf32>
    %78 = arith.select %72, %76, %77 : vector<8x128xi1>, vector<8x128xf32>
    %79 = vector.extract_strided_slice %7 {offsets = [3, 0], sizes = [1, 128], strides = [1, 1]} : vector<8x128xf32> to vector<1x128xf32>
    %80 = vector.extract_strided_slice %8 {offsets = [3, 0], sizes = [1, 128], strides = [1, 1]} : vector<8x128xf32> to vector<1x128xf32>
    %81 = vector.extract_strided_slice %9 {offsets = [3, 0], sizes = [1, 128], strides = [1, 1]} : vector<8x128xf32> to vector<1x128xf32>
    %82 = vector.extract_strided_slice %10 {offsets = [3, 0], sizes = [1, 128], strides = [1, 1]} : vector<8x128xf32> to vector<1x128xf32>
    %83 = vector.broadcast %79 : vector<1x128xf32> to vector<8x128xf32>
    %84 = arith.mulf %83, %75 : vector<8x128xf32>
    %85 = arith.addf %64, %84 : vector<8x128xf32>
    %86 = vector.broadcast %80 : vector<1x128xf32> to vector<8x128xf32>
    %87 = arith.mulf %86, %78 : vector<8x128xf32>
    %88 = arith.addf %85, %87 : vector<8x128xf32>
    %89 = vector.broadcast %81 : vector<1x128xf32> to vector<8x128xf32>
    %90 = arith.mulf %89, %75 : vector<8x128xf32>
    %91 = arith.addf %70, %90 : vector<8x128xf32>
    %92 = vector.broadcast %82 : vector<1x128xf32> to vector<8x128xf32>
    %93 = arith.mulf %92, %78 : vector<8x128xf32>
    %94 = arith.addf %91, %93 : vector<8x128xf32>
    %95 = vector.broadcast %16 : vector<1x128xf32> to vector<8x128xf32>
    %96 = arith.mulf %7, %95 : vector<8x128xf32>
    %97 = vector.broadcast %17 : vector<1x128xf32> to vector<8x128xf32>
    %98 = arith.mulf %8, %97 : vector<8x128xf32>
    %99 = arith.addf %96, %98 : vector<8x128xf32>
    %100 = arith.addf %99, %88 : vector<8x128xf32>
    %101 = vector.broadcast %16 : vector<1x128xf32> to vector<8x128xf32>
    %102 = arith.mulf %9, %101 : vector<8x128xf32>
    %103 = vector.broadcast %17 : vector<1x128xf32> to vector<8x128xf32>
    %104 = arith.mulf %10, %103 : vector<8x128xf32>
    %105 = arith.addf %102, %104 : vector<8x128xf32>
    %106 = arith.addf %105, %94 : vector<8x128xf32>
    %c0_34 = arith.constant 0 : index
    %c0_35 = arith.constant 0 : index
    %107 = vector.load %arg1[%c0_34, %c0_35] : memref<8x128xf32, #tpu.memory_space<vmem>>, vector<8x128xf32>
    %cst_36 = arith.constant dense<0.000000e+00> : vector<8x128xf32>
    %108 = tpu.matmul %106, %13, %cst_36 {dimension_numbers = #tpu.dot_dimension_numbers<[1], [0], [0], [1], [0, 0, 1, 1], [], []>} : vector<8x128xf32>, vector<128x128xf32>, vector<8x128xf32> -> vector<8x128xf32>
    %109 = vector.broadcast %14 : vector<1x128xf32> to vector<8x128xf32>
    %110 = arith.mulf %107, %109 : vector<8x128xf32>
    %111 = arith.addf %108, %110 : vector<8x128xf32>
    %c0_37 = arith.constant 0 : index
    %c0_38 = arith.constant 0 : index
    %112 = vector.load %arg6[%c0_37, %c0_38] : memref<8x128xf32, #tpu.memory_space<vmem>>, vector<8x128xf32>
    tpu.vector_store %arg6[%c0_37, %c0_38], %111 {strides = array<i32>} : memref<8x128xf32, #tpu.memory_space<vmem>>, vector<8x128xf32>,
    %113 = vector.extract_strided_slice %100 {offsets = [7, 0], sizes = [1, 128], strides = [1, 1]} : vector<8x128xf32> to vector<1x128xf32>
    %114 = vector.extract_strided_slice %106 {offsets = [7, 0], sizes = [1, 128], strides = [1, 1]} : vector<8x128xf32> to vector<1x128xf32>
    %c0_39 = arith.constant 0 : index
    %c0_40 = arith.constant 0 : index
    %115 = vector.load %arg8[%c0_39, %c0_40] : memref<8x128xf32, #tpu.memory_space<vmem>>, vector<1x128xf32>
    tpu.vector_store %arg8[%c0_39, %c0_40], %113 {strides = array<i32>} : memref<8x128xf32, #tpu.memory_space<vmem>>, vector<1x128xf32>,
    %c1_41 = arith.constant 1 : index
    %c0_42 = arith.constant 0 : index
    %116 = vector.load %arg8[%c1_41, %c0_42] : memref<8x128xf32, #tpu.memory_space<vmem>>, vector<1x128xf32>
    tpu.vector_store %arg8[%c1_41, %c0_42], %114 {strides = array<i32>} : memref<8x128xf32, #tpu.memory_space<vmem>>, vector<1x128xf32>,
    return
  }
  func.func @transform_0(%arg0: i32) -> (i32, i32) {
    %c0_i32 = arith.constant 0 : i32
    %c0_i32_0 = arith.constant 0 : i32
    return %arg0, %c0_i32 : i32, i32
  }
  func.func @transform_1(%arg0: i32) -> (i32, i32) {
    %c0_i32 = arith.constant 0 : i32
    %c0_i32_0 = arith.constant 0 : i32
    %c0_i32_1 = arith.constant 0 : i32
    return %c0_i32, %c0_i32_0 : i32, i32
  }
  func.func @transform_2(%arg0: i32) -> (i32, i32) {
    %c0_i32 = arith.constant 0 : i32
    %c0_i32_0 = arith.constant 0 : i32
    %c0_i32_1 = arith.constant 0 : i32
    return %c0_i32, %c0_i32_0 : i32, i32
  }
  func.func @transform_3(%arg0: i32) -> (i32, i32) {
    %c0_i32 = arith.constant 0 : i32
    %c0_i32_0 = arith.constant 0 : i32
    %c0_i32_1 = arith.constant 0 : i32
    return %c0_i32, %c0_i32_0 : i32, i32
  }
  func.func @transform_4(%arg0: i32) -> (i32, i32) {
    %c0_i32 = arith.constant 0 : i32
    %c0_i32_0 = arith.constant 0 : i32
    %c0_i32_1 = arith.constant 0 : i32
    return %c0_i32, %c0_i32_0 : i32, i32
  }
  func.func @transform_5(%arg0: i32) -> (i32, i32) {
    %c0_i32 = arith.constant 0 : i32
    %c0_i32_0 = arith.constant 0 : i32
    return %arg0, %c0_i32 : i32, i32
  }
}

</mosaic_0001>

<bundles_post_ra>
// kernel: linoss_layer_forward.1
= control target key start
LH: loop header
LB: loop body
LE: loop exit
PB: predicated region body
PF: predicated region fallthrough
CT: control target
= control target key end

     0   :  { %v484_v1 = vmov 0.0   ;;  %vm485_vm0 = vmmov 0   ;;  %s693_s0 = inlined_call_operand.vmem [shape: f32[8,128], index: 0, kind: input, shape index: {}]   ;;  %s694_s1 = inlined_call_operand.vmem [shape: f32[128,128], index: 1, kind: input, shape index: {}]   ;;  %s695_s2 = inlined_call_operand.vmem [shape: f32[128,128], index: 2, kind: input, shape index: {}]   ;;  %s696_s3 = inlined_call_operand.vmem [shape: f32[1,128], index: 3, kind: input, shape index: {}]   ;;  %s697_s4 = inlined_call_operand.vmem [shape: f32[40,128], index: 4, kind: input, shape index: {}]   ;;  %s698_s5 = inlined_call_operand.hbm [shape: f32[8,128], index: 5, kind: output, shape index: {}]  }
   0x1   :  { %v42_v0 = vld [vmem:[%s694_s1 + $0x78] sm:$0xff]  ;;  %389 = vmatprep.subr.mxu0 %v484_v1  ;;  %25 = vst [vmem:[#allocation3] sm:$0xff] %v484_v1  ;;  %v41_v2 = vld [vmem:[%s694_s1 + $0x70] sm:$0xff]  ;;  %421 = vmatprep.mubr.msk.f32.mxu0 %vm485_vm0, %v484_v1  ;;  %v40_v3 = vld [vmem:[%s694_s1 + $0x68] sm:$0xff] }
   0x2   :  { %390 = vmatpush3.msra.mxu0 %v42_v0  ;;  %424 = vmatprep.subr.mxu1 %v484_v1  ;;  %v39_v4 = vld [vmem:[%s694_s1 + $0x60] sm:$0xff] }
   0x3   :  { %391 = vmatprep.subr.mxu0 %v484_v1  ;;  %456 = vmatprep.mubr.msk.f32.mxu1 %vm485_vm0, %v484_v1 }
   0x4   :  { %392 = vmatpush3.msra.mxu0 %v41_v2 }
   0x5   :  { %393 = vmatprep.subr.mxu0 %v484_v1 }
   0x6   :  { %10 = vsyncpa [#allocation5], 0  ;;  %394 = vmatpush3.msra.mxu0 %v40_v3  ;;  %v38_v5 = vld [vmem:[%s694_s1 + $0x58] sm:$0xff]  ;;  %v37_v6 = vld [vmem:[%s694_s1 + $0x50] sm:$0xff]  ;;  %v137_v34 = vlaneseq  ;;  %s486_s17 = smov [#allocation4]  }
   0x7   :  { %395 = vmatprep.subr.mxu0 %v484_v1  ;;  %v36_v7 = vld [vmem:[%s694_s1 + $0x48] sm:$0xff]  ;;  %v35_v8 = vld [vmem:[%s694_s1 + $0x40] sm:$0xff]  ;;  %v34_v9 = vld [vmem:[%s694_s1 + $0x38] sm:$0xff]  ;;  %s342_s18 = sshll.u32 %s486_s17, 4  ;;  %s343_s18 = int_to_ptr.vmem [resolvable:$true] %s342_s18 }
   0x8   :  { %396 = vmatpush3.msra.mxu0 %v39_v4  ;;  %v33_v10 = vld [vmem:[%s694_s1 + $0x30] sm:$0xff]  ;;  %v32_v11 = vld [vmem:[%s694_s1 + $0x28] sm:$0xff]  ;;  %v31_v12 = vld [vmem:[%s694_s1 + $0x20] sm:$0xff]  ;;  %v654_v35 = vshrl.u32 %v137_v34, 7  ;;  %s462_s19 = scalar_lea.vmem %s343_s18, 128  ;;  %p467_p1 = scmp.lt.s32.totalorder %s343_s18, %s343_s18 }
   0x9   :  { %397 = vmatprep.subr.mxu0 %v484_v1  ;;  %v30_v13 = vld [vmem:[%s694_s1 + $0x18] sm:$0xff]  ;;  %v29_v14 = vld [vmem:[%s694_s1 + $0x10] sm:$0xff]  ;;  %v28_v15 = vld [vmem:[%s694_s1 + $0x8] sm:$0xff]  ;;  %p463_p0 = scmp.ne.s32.totalorder %s343_s18, %s462_s19  ;;  %p468_p2 = scmp.lt.s32.totalorder %s462_s19, %s462_s19 }
   0xa   :  { %398 = vmatpush3.msra.mxu0 %v38_v5  ;;  %v27_v16 = vld [vmem:[%s694_s1] sm:$0xff]  ;;  %v135_v18 = vld [vmem:[%s695_s2 + $0x78] sm:$0xff]  ;;  %v134_v19 = vld [vmem:[%s695_s2 + $0x70] sm:$0xff]  ;;  %v159_v38 = vsub.s32 0, %v654_v35  ;;  %vm152_vm1 = vcmp.ge.s32.totalorder %v654_v35, 1  ;;  %v188_v57 = vsub.s32 1, %v654_v35 }
   0xb   :  { %399 = vmatprep.subr.mxu0 %v484_v1  ;;  %v587_v17 = vld [vmem:[%s693_s0] sm:$0xff]  ;;  %425 = vmatpush3.msra.mxu1 %v135_v18  ;;  %v133_v20 = vld [vmem:[%s695_s2 + $0x68] sm:$0xff]  ;;  %v131_v22 = vld [vmem:[%s695_s2 + $0x58] sm:$0xff]  ;;  %vm181_vm2 = vcmp.ge.s32.totalorder %v654_v35, 2  ;;  %vm210_vm3 = vcmp.ge.s32.totalorder %v654_v35, 4  ;;  %p469_p3 = por %p468_p2, %p467_p1 }
   0xc   :  { %400 = vmatpush3.msra.mxu0 %v37_v6  ;;  %426 = vmatprep.subr.mxu1 %v484_v1  ;;  %v132_v21 = vld [vmem:[%s695_s2 + $0x60] sm:$0xff]  ;;  %v130_v23 = vld [vmem:[%s695_s2 + $0x50] sm:$0xff]  ;;  %v129_v24 = vld [vmem:[%s695_s2 + $0x48] sm:$0xff] }
   0xd   :  { %401 = vmatprep.subr.mxu0 %v484_v1  ;;  %427 = vmatpush3.msra.mxu1 %v134_v19  ;;  %v128_v25 = vld [vmem:[%s695_s2 + $0x40] sm:$0xff]  ;;  %v127_v26 = vld [vmem:[%s695_s2 + $0x38] sm:$0xff]  ;;  %v126_v27 = vld [vmem:[%s695_s2 + $0x30] sm:$0xff]  ;;  %p470_p4 = pnand %p469_p3, %p463_p0 }
   0xe   :  { %402 = vmatpush3.msra.mxu0 %v36_v7  ;;  %428 = vmatprep.subr.mxu1 %v484_v1  ;;  %v125_v28 = vld [vmem:[%s695_s2 + $0x28] sm:$0xff]  ;;  %v124_v29 = vld [vmem:[%s695_s2 + $0x20] sm:$0xff]  ;;  %v123_v30 = vld [vmem:[%s695_s2 + $0x18] sm:$0xff] }
   0xf   :  { %403 = vmatprep.subr.mxu0 %v484_v1  ;;  %429 = vmatpush3.msra.mxu1 %v133_v20  ;;  %v122_v31 = vld [vmem:[%s695_s2 + $0x10] sm:$0xff]  ;;  %v121_v32 = vld [vmem:[%s695_s2 + $0x8] sm:$0xff]  ;;  %v120_v33 = vld [vmem:[%s695_s2] sm:$0xff] }
  0x10   :  { %404 = vmatpush3.msra.mxu0 %v35_v8  ;;  %430 = vmatprep.subr.mxu1 %v484_v1  ;;  %v350_v36 = vld [vmem:[%s697_s4 + $0x20] ss:$0 sm:$0xff]  ;;  %v351_v37 = vld [vmem:[%s697_s4 + $0x21] ss:$0 sm:$0xff]  ;;  %v116_v40 = vld [vmem:[%s697_s4 + $0x10] sm:$0xff] }
  0x11   :  { %405 = vmatprep.subr.mxu0 %v484_v1  ;;  %431 = vmatpush3.msra.mxu1 %v132_v21  ;;  %v114_v39 = vld [vmem:[%s697_s4] sm:$0xff]  ;;  %v115_v42 = vld [vmem:[%s697_s4 + $0x8] sm:$0xff]  ;;  %v675_v43 = vld [vmem:[%s697_s4 + $0x18] sm:$0xff]  ;;  %v172_v47 = vrot.slane %v116_v40, %v159_v38 }
  0x12   :  { %406 = vmatpush3.msra.mxu0 %v34_v9  ;;  %432 = vmatprep.subr.mxu1 %v484_v1  ;;  %v160_v46 = vrot.slane %v114_v39, %v159_v38  ;;  %v166_v51 = vrot.slane %v115_v42, %v159_v38  ;;  %v178_v52 = vrot.slane %v675_v43, %v159_v38 }
  0x13   :  { %407 = vmatprep.subr.mxu0 %v484_v1  ;;  %433 = vmatpush3.msra.mxu1 %v131_v22  ;;  %v189_v0 = vrot.slane %v114_v39, %v188_v57  ;;  %v195_v4 = vrot.slane %v115_v42, %v188_v57  ;;  %v207_v5 = vrot.slane %v675_v43, %v188_v57 }
  0x14   :  { %408 = vmatpush3.msra.mxu0 %v33_v10  ;;  %434 = vmatprep.subr.mxu1 %v484_v1  ;;  %v217_v10 = vsub.s32 3, %v654_v35 }
  0x15   :  { %409 = vmatprep.subr.mxu0 %v484_v1  ;;  %435 = vmatpush3.msra.mxu1 %v130_v23 }
  0x16   :  { %410 = vmatpush3.msra.mxu0 %v32_v11  ;;  %436 = vmatprep.subr.mxu1 %v484_v1  ;;  %v218_v20 = vrot.slane %v114_v39, %v217_v10  ;;  %v230_v21 = vrot.slane %v116_v40, %v217_v10 }
  0x17   :  { %411 = vmatprep.subr.mxu0 %v484_v1  ;;  %437 = vmatpush3.msra.mxu1 %v129_v24 }
  0x18   :  { %412 = vmatpush3.msra.mxu0 %v31_v12  ;;  %438 = vmatprep.subr.mxu1 %v484_v1 }
  0x19   :  { %413 = vmatprep.subr.mxu0 %v484_v1  ;;  %439 = vmatpush3.msra.mxu1 %v128_v25 }
  0x1a   :  { %414 = vmatpush3.msra.mxu0 %v30_v13  ;;  %440 = vmatprep.subr.mxu1 %v484_v1 }
  0x1b   :  { %415 = vmatprep.subr.mxu0 %v484_v1  ;;  %441 = vmatpush3.msra.mxu1 %v127_v26 }
  0x1c   :  { %416 = vmatpush3.msra.mxu0 %v29_v14  ;;  %442 = vmatprep.subr.mxu1 %v484_v1 }
  0x1d   :  { %417 = vmatprep.subr.mxu0 %v484_v1  ;;  %443 = vmatpush3.msra.mxu1 %v126_v27 }
  0x1e   :  { %418 = vmatpush3.msra.mxu0 %v28_v15  ;;  %444 = vmatprep.subr.mxu1 %v484_v1  ;;  %v352_v15 = vld [vmem:[#allocation3] ss:$0 sm:$0xff] }
  0x1f   :  { %419 = vmatprep.subr.mxu0 %v484_v1  ;;  %445 = vmatpush3.msra.mxu1 %v125_v28  ;;  %v243_v22 = vmul.f32 %v352_v15, %v114_v39  ;;  %v251_v26 = vmul.f32 %v352_v15, %v116_v40  ;;  %v224_v28 = vrot.slane %v115_v42, %v217_v10 }
  0x20   :  { %420 = vmatpush3.msra.mxu0 %v27_v16  ;;  %446 = vmatprep.subr.mxu1 %v484_v1  ;;  %v353_v16 = vld [vmem:[#allocation3 + $0x1] ss:$0 sm:$0xff] }
  0x21   :  { %422 = vmatmul.mubr.f32.vlgmr.msra.gmra.mxu0 %v587_v17  ;;  %447 = vmatpush3.msra.mxu1 %v124_v29  ;;  %v248_v23 = vmul.f32 %v353_v16, %v115_v42  ;;  %v252_v27 = vmul.f32 %v353_v16, %v675_v43  ;;  %v236_v29 = vrot.slane %v675_v43, %v217_v10 }
  0x22   :  { %448 = vmatprep.subr.mxu1 %v484_v1 }
  0x23   :  { %449 = vmatpush3.msra.mxu1 %v123_v30  ;;  %v249_v34 = vadd.f32 %v248_v23, %v243_v22 }
  0x24   :  { %450 = vmatprep.subr.mxu1 %v484_v1 }
  0x25   :  { %451 = vmatpush3.msra.mxu1 %v122_v31 }
  0x26   :  { %452 = vmatprep.subr.mxu1 %v484_v1 }
  0x27   :  { %453 = vmatpush3.msra.mxu1 %v121_v32 }
  0x28   :  { %454 = vmatprep.subr.mxu1 %v484_v1  ;;  %v201_v1 = vrot.slane %v116_v40, %v188_v57  ;;  %v354_v40 = vld [vmem:[%s696_s3] ss:$0 sm:$0xff] }
  0x29   :  { %455 = vmatpush3.msra.mxu1 %v120_v33  ;;  %v262_v42 = vmul.f32 %v354_v40, %v587_v17 }
  0xe1   :  { %v109_v41 = vpop.f32.mrf.mxu0 }
  0xe2   :  { %v146_v44 = vmul.f32 %v350_v36, %v109_v41  ;;  %v151_v45 = vmul.f32 %v351_v37, %v109_v41  ;;  %v253_v36 = vadd.f32 %v252_v27, %v251_v26 }
  0xe3   :  { %v423_v48 = vpop.f32.mrf.mxu0 }
  0xe4   :  { %v153_v49 = vrot.slane %v146_v44, 7  ;;  %v155_v50 = vrot.slane %v151_v45, 7 }
  0xe6   :  { %v154_v53 = vsel %vm152_vm1, %v153_v49, 0.0  ;;  %v156_v54 = vsel %vm152_vm1, %v155_v50, 0.0 }
  0xe7   :  { %v161_v55 = vmul.f32 %v160_v46, %v154_v53  ;;  %v173_v56 = vmul.f32 %v172_v47, %v154_v53  ;;  %v167_v59 = vmul.f32 %v166_v51, %v156_v54  ;;  %v179_v61 = vmul.f32 %v178_v52, %v156_v54 }
  0xe9   :  { %v162_v58 = vadd.f32 %v161_v55, %v146_v44  ;;  %v174_v60 = vadd.f32 %v173_v56, %v151_v45 }
  0xeb   :  { %v168_v62 = vadd.f32 %v167_v59, %v162_v58  ;;  %v180_v63 = vadd.f32 %v179_v61, %v174_v60 }
  0xed   :  { %v182_v2 = vrot.slane %v168_v62, 6  ;;  %v184_v3 = vrot.slane %v180_v63, 6 }
  0xef   :  { %v183_v6 = vsel %vm181_vm2, %v182_v2, 0.0  ;;  %v185_v7 = vsel %vm181_vm2, %v184_v3, 0.0 }
  0xf0   :  { %v190_v8 = vmul.f32 %v189_v0, %v183_v6  ;;  %v202_v9 = vmul.f32 %v201_v1, %v183_v6  ;;  %v196_v12 = vmul.f32 %v195_v4, %v185_v7  ;;  %v208_v14 = vmul.f32 %v207_v5, %v185_v7 }
  0xf2   :  { %v191_v11 = vadd.f32 %v190_v8, %v168_v62  ;;  %v203_v13 = vadd.f32 %v202_v9, %v180_v63 }
  0xf4   :  { %v197_v18 = vadd.f32 %v196_v12, %v191_v11  ;;  %v209_v19 = vadd.f32 %v208_v14, %v203_v13 }
  0xf6   :  { %v211_v24 = vrot.slane %v197_v18, 4  ;;  %v213_v25 = vrot.slane %v209_v19, 4 }
  0xf8   :  { %v212_v30 = vsel %vm210_vm3, %v211_v24, 0.0  ;;  %v214_v31 = vsel %vm210_vm3, %v213_v25, 0.0 }
  0xf9   :  { %v219_v32 = vmul.f32 %v218_v20, %v212_v30  ;;  %v231_v33 = vmul.f32 %v230_v21, %v212_v30  ;;  %v225_v35 = vmul.f32 %v224_v28, %v214_v31  ;;  %v237_v41 = vmul.f32 %v236_v29, %v214_v31 }
  0xfb   :  { %v220_v37 = vadd.f32 %v219_v32, %v197_v18  ;;  %v232_v38 = vadd.f32 %v231_v33, %v209_v19 }
  0xfd   :  { %v226_v39 = vadd.f32 %v225_v35, %v220_v37  ;;  %v238_v44 = vadd.f32 %v237_v41, %v232_v38 }
  0xff   :  { %v250_v45 = vadd.f32 %v249_v34, %v226_v39  ;;  %v254_v46 = vadd.f32 %v253_v36, %v238_v44 }
 0x101   :  { %457 = vmatmul.mubr.f32.vlgmr.msra.gmra.mxu1 %v254_v46  ;;  %334 = vst [vmem:[#allocation3 - $0x7] sm:$0x80] %v250_v45  ;;  %335 = vst [vmem:[#allocation3 - $0x6] sm:$0x80] %v254_v46 }
 0x1c1   :  { %v329_v43 = vpop.f32.mrf.mxu1 }
 0x1c2   :  { %v330_v47 = vadd.f32 %v329_v43, %v262_v42 }
 0x1c3   :  { %v458_v48 = vpop.f32.mrf.mxu1 }
 0x1c4   :  { %333 = vst [vmem:[#allocation4] sm:$0xff] %v330_v47 }
 0x1c5   :  { %473 = shalt.err (!%p470_p4)
}
 0x1c6   :  { %345 = dma.vmem_to_hbm [thread:$0]  %s343_s18, 128, %s698_s5, [#allocation5]  }
 0x1c7   :  { %482 = dma.done.wait [#allocation5], 128  }
 0x1c8   :  { %483 = vsyncadd [#allocation5], 4294967168 }
 0x1c9   :  { %349 = vsyncpa [#allocation5], 1 }

</bundles_post_ra>
